<compile_context>
chip_gen: v7x
topology: tpu7x:2x2x1
jax: 0.10.0
libtpu: 0.0.40
codegen_flags: <defaults>
</compile_context>

<pallas_src>
import math
import functools

import jax
import jax.numpy as jnp
import numpy as np
from jax import lax
from jax.experimental import pallas as pl
from jax.experimental.pallas import tpu as pltpu


_SIGN_BIT = np.uint32(0x80000000)


def _half_erf(z):
    """0.5 * erf(z) via Abramowitz & Stegun 7.1.26 (|err| <= 7.5e-8 on the 0.5*erf).

    VALU-lean variant: the 0.5 factor is folded into the polynomial coefficients,
    the inner divide runs on the EUP (approx reciprocal + one Newton refinement,
    ~f32 accurate), and the sign is applied with a sign-bit OR instead of where+mul.
    exp() also runs on the EUP.
    """
    a1 = 0.5 * 0.254829592
    a2 = 0.5 * -0.284496736
    a3 = 0.5 * 1.421413741
    a4 = 0.5 * -1.453152027
    a5 = 0.5 * 1.061405429
    p = 0.3275911

    az = jnp.abs(z)
    d = 1.0 + p * az
    r = pl.reciprocal(d, approx=True)          # EUP
    t = r * (2.0 - d * r)                      # one Newton step -> ~f32 precision
    poly = ((((a5 * t + a4) * t + a3) * t + a2) * t + a1) * t
    mag = 0.5 - poly * jnp.exp(-(z * z))       # == 0.5*|erf(z)| >= 0
    sign = pltpu.bitcast(z, jnp.uint32) & _SIGN_BIT
    return pltpu.bitcast(pltpu.bitcast(mag, jnp.uint32) | sign, jnp.float32)


def _fdc_kernel(x_ref, mean_ref, sigma2_ref, fidx_ref, out_ref, *, two_noise_sq, guard_den):
    # x_ref: (B, F, Tt) time-on-lanes; mean_ref/sigma2_ref/fidx_ref: (1, F, 1);
    # out_ref: (B, 1, Tt).  NOTE: B is never tiled -- the cue is keyed off the true
    # batch-0 row, so every block must see the full batch dimension.
    x = x_ref[...]
    mean = mean_ref[...]          # mean / sqrt(2)   (pre-scaled in the wrapper)
    sigma2 = sigma2_ref[...]      # exp(log_sigma)^2 (precomputed in the wrapper)
    fidx = fidx_ref[...]          # [0, 1, ..., F-1] as f32 on the sublane axis

    # Per-feature probit predictive distribution, vectorized over time (lanes):
    #   theta_j = Phi( x * m_j / sqrt(2*noise^2 + x^2 * sigma_j^2) )
    den = two_noise_sq + (x * x) * sigma2
    if guard_den:                                  # only emitted when noise == 0
        den = jnp.maximum(den, 1e-30)
    z = (x * mean) * lax.rsqrt(den)                # 1/sqrt(2) already folded into mean
    theta_all = 0.5 + _half_erf(z)                 # (B, F, Tt)

    # First-discriminating-cue selection, keyed off batch 0 (matches the module):
    # smallest feature index with a nonzero cue, else 0.5.
    f = x.shape[1]
    sentinel = float(f)
    nz = x[0:1] != 0.0                                                     # (1, F, Tt)
    first = jnp.min(jnp.where(nz, fidx, sentinel), axis=1, keepdims=True)  # (1, 1, Tt)
    w = (fidx == first).astype(jnp.float32)        # (1, F, Tt) one-hot (all-zero if no cue)
    theta_sel = jnp.sum(w * theta_all, axis=1, keepdims=True)              # (B, 1, Tt)
    no_cue = (first >= sentinel).astype(jnp.float32)                       # (1, 1, Tt)
    out_ref[...] = theta_sel + 0.5 * no_cue


def _choose_t_tile(T, B, F, vmem_block_budget=24 * 1024 * 1024):
    """Pick a lane (time) tile from a VMEM budget.

    Budget covers the double-buffered x/out blocks plus an allowance for
    (B, F, Tt)-shaped f32 intermediates the compiler keeps in VMEM for large
    blocks.  Result is a multiple of 128, capped so v7x's 64 MiB VMEM (32 MiB
    scoped) is safe, and small enough to leave >= 2 grid steps when T allows it.
    """
    f_pad = ((F + 7) // 8) * 8
    lane_bytes = 4 * (2 * B * f_pad      # x block, double-buffered
                      + 2 * B * 8        # out block, double-buffered (sublane-padded)
                      + 12 * B * f_pad)  # live elementwise intermediates / spills
    t_tile = int(vmem_block_budget // lane_bytes)
    t_tile = max(128, min(t_tile, 256 * 1024))
    t_tile = (t_tile // 128) * 128

    t_pad128 = ((T + 127) // 128) * 128
    if t_pad128 > 128:
        # Keep >= 2 grid steps so both v7x TensorCores get work (neutral on v5e/v6e).
        half = ((((T + 1) // 2) + 127) // 128) * 128
        t_tile = min(t_tile, max(128, half))
    t_tile = min(t_tile, t_pad128)
    return max(128, t_tile)


def variational_first_discriminating_cue(inputs, targets, mean, log_sigma, noise=1.0):
    """Returns the Bernoulli probs of VariationalFirstDiscriminatingCue.forward.

    inputs: (T, B, F) f32, targets: (T, B, 1) f32 (shape only),
    mean / log_sigma: (F,) f32 -- the F per-model (1,1) parameters stacked.
    """
    T, B, F = inputs.shape
    assert targets.shape == (T, B, 1)

    # Lane-dense re-layout: time -> lanes, features -> sublanes.  The transpose and
    # zero-padding are marked fusible into the pallas_call operand (allow_input_fusion)
    # so the relaid-out tensor need not be materialized in HBM by a standalone XLA op.
    x_bft = jnp.transpose(inputs.astype(jnp.float32), (1, 2, 0))          # (B, F, T)

    t_tile = _choose_t_tile(T, B, F)
    t_pad = ((T + t_tile - 1) // t_tile) * t_tile
    if t_pad > T:
        # Zero-padded timesteps have no nonzero cue -> 0.5; sliced off below.
        x_bft = jnp.pad(x_bft, ((0, 0), (0, 0), (0, t_pad - T)))
    grid = (t_pad // t_tile,)

    mean3 = (jnp.asarray(mean, jnp.float32) / math.sqrt(2.0)).reshape(1, F, 1)
    sigma2 = jnp.exp(2.0 * jnp.asarray(log_sigma, jnp.float32)).reshape(1, F, 1)
    fidx = jnp.arange(F, dtype=jnp.float32).reshape(1, F, 1)

    noise = float(noise)
    kernel = functools.partial(_fdc_kernel,
                               two_noise_sq=2.0 * noise * noise,
                               guard_den=(noise == 0.0))

    out_b1t = pl.pallas_call(
        kernel,
        out_shape=jax.ShapeDtypeStruct((B, 1, t_pad), jnp.float32),
        grid=grid,
        in_specs=[
            pl.BlockSpec((B, F, t_tile), lambda i: (0, 0, i)),   # time tiles on lanes
            pl.BlockSpec((1, F, 1), lambda i: (0, 0, 0)),        # mean / sqrt(2)
            pl.BlockSpec((1, F, 1), lambda i: (0, 0, 0)),        # exp(log_sigma)^2
            pl.BlockSpec((1, F, 1), lambda i: (0, 0, 0)),        # feature indices
        ],
        out_specs=pl.BlockSpec((B, 1, t_tile), lambda i: (0, 0, i)),
        compiler_params=pltpu.CompilerParams(
            dimension_semantics=("parallel",),
            vmem_limit_bytes=32 * 1024 * 1024,
            allow_input_fusion=[True, False, False, False],
        ),
    )(x_bft, mean3, sigma2, fidx)

    # (B, 1, T_pad) -> slice padding -> (T, B, 1) to match the module's layout.
    return jnp.transpose(out_b1t[:, :, :T], (2, 0, 1))


def _reference(inputs, mean, log_sigma, noise):
    # Pure numpy reference of the same forward semantics (float64, exact erf).
    x = np.asarray(inputs, np.float64)
    m = np.asarray(mean, np.float64).reshape(1, 1, -1)
    ls = np.asarray(log_sigma, np.float64).reshape(1, 1, -1)
    z = (x * m) / np.sqrt(2.0 * noise * noise + x * x * np.exp(ls) ** 2)
    theta_all = 0.5 * (1.0 + np.vectorize(math.erf)(z / math.sqrt(2.0)))
    T, B, F = x.shape
    out = np.full((T, B, 1), 0.5)
    for t in range(T):
        for j in range(F):
            if x[t, 0, j] != 0:
                out[t] = theta_all[t, :, j:j + 1]
                break
    return out


if __name__ == "__main__":
    T, B, F = 8, 1, 4  # seq=8, batch=1 (module's math.sqrt implies scalar denom), num_features=4
    key = jax.random.PRNGKey(0)
    k_in, k_tg, k_m, k_s = jax.random.split(key, 4)

    # Cue-style inputs in {-1, 0, 1} so the "first nonzero cue" path is exercised.
    inputs = jax.random.randint(k_in, (T, B, F), -1, 2).astype(jnp.float32)
    targets = jax.random.bernoulli(k_tg, 0.5, (T, B, 1)).astype(jnp.float32)

    # Deterministic synthetic parameters (module __init__ uses zeros for the (1,1)
    # mean / log_sigma of each of the F sub-models; small nonzero values here so the
    # kernel math is non-trivial).
    mean = 0.5 * jax.random.normal(k_m, (F,), jnp.float32)
    log_sigma = 0.1 * jax.random.normal(k_s, (F,), jnp.float32)
    noise = 1.0

    probs = variational_first_discriminating_cue(inputs, targets, mean, log_sigma, noise)
    probs = jax.block_until_ready(probs)

    ref = _reference(inputs, mean, log_sigma, noise)
    assert probs.shape == (T, B, 1)
    np.testing.assert_allclose(np.asarray(probs), ref, atol=1e-5, rtol=1e-5)

    print("KERNEL_OK")
</pallas_src>

<mosaic_0001>
module attributes {stable_mosaic.version = 11 : i64} {
  func.func @_fdc_kernel(%arg0: i32, %arg1: memref<1x4x128xf32, #tpu.memory_space<vmem>>, %arg2: memref<1x4x1xf32, #tpu.memory_space<vmem>>, %arg3: memref<1x4x1xf32, #tpu.memory_space<vmem>>, %arg4: memref<1x4x1xf32, #tpu.memory_space<vmem>>, %arg5: memref<1x1x128xf32, #tpu.memory_space<vmem>>) attributes {dimension_semantics = [#tpu.dimension_semantics<parallel>], iteration_bounds = array<i64: 1>, scalar_prefetch = 0 : i64, scratch_operands = 0 : i64, tpu.core_type = #tpu.core_type<tc>, window_params = [{transform_indices = @transform_0, window_bounds = array<i64: 1, 4, 128>}, {pipeline_mode = #tpu.pipeline_mode<synchronous>, transform_indices = @transform_1, window_bounds = array<i64: 1, 4, 1>}, {pipeline_mode = #tpu.pipeline_mode<synchronous>, transform_indices = @transform_2, window_bounds = array<i64: 1, 4, 1>}, {pipeline_mode = #tpu.pipeline_mode<synchronous>, transform_indices = @transform_3, window_bounds = array<i64: 1, 4, 1>}, {transform_indices = @transform_4, window_bounds = array<i64: 1, 1, 128>}]} {
    %c0 = arith.constant 0 : index
    %c0_0 = arith.constant 0 : index
    %c0_1 = arith.constant 0 : index
    %0 = vector.load %arg1[%c0, %c0_0, %c0_1] : memref<1x4x128xf32, #tpu.memory_space<vmem>>, vector<1x4x128xf32>
    %c0_2 = arith.constant 0 : index
    %c0_3 = arith.constant 0 : index
    %c0_4 = arith.constant 0 : index
    %1 = vector.load %arg2[%c0_2, %c0_3, %c0_4] : memref<1x4x1xf32, #tpu.memory_space<vmem>>, vector<1x4x1xf32>
    %c0_5 = arith.constant 0 : index
    %c0_6 = arith.constant 0 : index
    %c0_7 = arith.constant 0 : index
    %2 = vector.load %arg3[%c0_5, %c0_6, %c0_7] : memref<1x4x1xf32, #tpu.memory_space<vmem>>, vector<1x4x1xf32>
    %c0_8 = arith.constant 0 : index
    %c0_9 = arith.constant 0 : index
    %c0_10 = arith.constant 0 : index
    %3 = vector.load %arg4[%c0_8, %c0_9, %c0_10] : memref<1x4x1xf32, #tpu.memory_space<vmem>>, vector<1x4x1xf32>
    %4 = arith.mulf %0, %0 : vector<1x4x128xf32>
    %5 = vector.broadcast %2 : vector<1x4x1xf32> to vector<1x4x128xf32>
    %6 = arith.mulf %4, %5 : vector<1x4x128xf32>
    %cst = arith.constant 2.000000e+00 : f32
    %7 = vector.broadcast %cst : f32 to vector<1x4x128xf32>
    %8 = arith.addf %7, %6 : vector<1x4x128xf32>
    %9 = vector.broadcast %1 : vector<1x4x1xf32> to vector<1x4x128xf32>
    %10 = arith.mulf %0, %9 : vector<1x4x128xf32>
    %11 = math.rsqrt %8 : vector<1x4x128xf32>
    %12 = arith.mulf %10, %11 : vector<1x4x128xf32>
    %13 = math.absf %12 : vector<1x4x128xf32>
    %cst_11 = arith.constant 0.327591091 : f32
    %14 = vector.broadcast %cst_11 : f32 to vector<1x4x128xf32>
    %15 = arith.mulf %14, %13 : vector<1x4x128xf32>
    %cst_12 = arith.constant 1.000000e+00 : f32
    %16 = vector.broadcast %cst_12 : f32 to vector<1x4x128xf32>
    %17 = arith.addf %16, %15 : vector<1x4x128xf32>
    %18 = tpu.reciprocal %17 {approx = true} : vector<1x4x128xf32> -> vector<1x4x128xf32>
    %19 = arith.mulf %17, %18 : vector<1x4x128xf32>
    %cst_13 = arith.constant 2.000000e+00 : f32
    %20 = vector.broadcast %cst_13 : f32 to vector<1x4x128xf32>
    %21 = arith.subf %20, %19 : vector<1x4x128xf32>
    %22 = arith.mulf %18, %21 : vector<1x4x128xf32>
    %cst_14 = arith.constant 0.53070271 : f32
    %23 = vector.broadcast %cst_14 : f32 to vector<1x4x128xf32>
    %24 = arith.mulf %23, %22 : vector<1x4x128xf32>
    %cst_15 = arith.constant -0.72657603 : f32
    %25 = vector.broadcast %cst_15 : f32 to vector<1x4x128xf32>
    %26 = arith.addf %24, %25 : vector<1x4x128xf32>
    %27 = arith.mulf %26, %22 : vector<1x4x128xf32>
    %cst_16 = arith.constant 0.710706889 : f32
    %28 = vector.broadcast %cst_16 : f32 to vector<1x4x128xf32>
    %29 = arith.addf %27, %28 : vector<1x4x128xf32>
    %30 = arith.mulf %29, %22 : vector<1x4x128xf32>
    %cst_17 = arith.constant -0.142248362 : f32
    %31 = vector.broadcast %cst_17 : f32 to vector<1x4x128xf32>
    %32 = arith.addf %30, %31 : vector<1x4x128xf32>
    %33 = arith.mulf %32, %22 : vector<1x4x128xf32>
    %cst_18 = arith.constant 0.127414793 : f32
    %34 = vector.broadcast %cst_18 : f32 to vector<1x4x128xf32>
    %35 = arith.addf %33, %34 : vector<1x4x128xf32>
    %36 = arith.mulf %35, %22 : vector<1x4x128xf32>
    %37 = arith.mulf %12, %12 : vector<1x4x128xf32>
    %cst_19 = arith.constant 0.000000e+00 : f32
    %38 = vector.broadcast %cst_19 : f32 to vector<1x4x128xf32>
    %39 = arith.subf %38, %37 : vector<1x4x128xf32>
    %40 = math.exp %39 : vector<1x4x128xf32>
    %41 = arith.mulf %36, %40 : vector<1x4x128xf32>
    %cst_20 = arith.constant 5.000000e-01 : f32
    %42 = vector.broadcast %cst_20 : f32 to vector<1x4x128xf32>
    %43 = arith.subf %42, %41 : vector<1x4x128xf32>
    %44 = tpu.bitcast %12 : vector<1x4x128xf32> -> vector<1x4x128xi32>
    %c-2147483648_i32 = arith.constant -2147483648 : i32
    %45 = vector.broadcast %c-2147483648_i32 : i32 to vector<1x4x128xi32>
    %46 = arith.andi %44, %45 : vector<1x4x128xi32>
    %47 = tpu.bitcast %43 : vector<1x4x128xf32> -> vector<1x4x128xi32>
    %48 = arith.ori %47, %46 : vector<1x4x128xi32>
    %49 = tpu.bitcast %48 : vector<1x4x128xi32> -> vector<1x4x128xf32>
    %cst_21 = arith.constant 5.000000e-01 : f32
    %50 = vector.broadcast %cst_21 : f32 to vector<1x4x128xf32>
    %51 = arith.addf %50, %49 : vector<1x4x128xf32>
    %cst_22 = arith.constant 0.000000e+00 : f32
    %52 = vector.broadcast %cst_22 : f32 to vector<1x4x128xf32>
    %53 = arith.cmpf one, %0, %52 : vector<1x4x128xf32>
    %cst_23 = arith.constant 4.000000e+00 : f32
    %54 = vector.shape_cast %3 : vector<1x4x1xf32> to vector<1x4x1xf32>
    %55 = vector.broadcast %54 : vector<1x4x1xf32> to vector<1x4x128xf32>
    %56 = vector.broadcast %cst_23 : f32 to vector<1x4x128xf32>
    %57 = arith.select %53, %55, %56 : vector<1x4x128xi1>, vector<1x4x128xf32>
    %cst_24 = arith.constant dense<0x7F800000> : vector<1x128xf32>
    %58 = vector.multi_reduction <minimumf>, %57, %cst_24 [1] : vector<1x4x128xf32> to vector<1x128xf32>
    %59 = vector.shape_cast %58 : vector<1x128xf32> to vector<1x1x128xf32>
    %60 = vector.broadcast %3 : vector<1x4x1xf32> to vector<1x4x128xf32>
    %61 = vector.broadcast %59 : vector<1x1x128xf32> to vector<1x4x128xf32>
    %62 = arith.cmpf oeq, %60, %61 : vector<1x4x128xf32>
    %63 = arith.extui %62 : vector<1x4x128xi1> to vector<1x4x128xi32>
    %64 = arith.sitofp %63 : vector<1x4x128xi32> to vector<1x4x128xf32>
    %65 = arith.mulf %64, %51 : vector<1x4x128xf32>
    %cst_25 = arith.constant dense<0.000000e+00> : vector<1x128xf32>
    %66 = vector.multi_reduction <add>, %65, %cst_25 [1] : vector<1x4x128xf32> to vector<1x128xf32>
    %67 = vector.shape_cast %66 : vector<1x128xf32> to vector<1x1x128xf32>
    %cst_26 = arith.constant 4.000000e+00 : f32
    %68 = vector.broadcast %cst_26 : f32 to vector<1x1x128xf32>
    %69 = arith.cmpf oge, %59, %68 : vector<1x1x128xf32>
    %70 = arith.extui %69 : vector<1x1x128xi1> to vector<1x1x128xi32>
    %71 = arith.sitofp %70 : vector<1x1x128xi32> to vector<1x1x128xf32>
    %cst_27 = arith.constant 5.000000e-01 : f32
    %72 = vector.broadcast %cst_27 : f32 to vector<1x1x128xf32>
    %73 = arith.mulf %72, %71 : vector<1x1x128xf32>
    %74 = arith.addf %67, %73 : vector<1x1x128xf32>
    %c0_28 = arith.constant 0 : index
    %c0_29 = arith.constant 0 : index
    %c0_30 = arith.constant 0 : index
    %75 = vector.load %arg5[%c0_28, %c0_29, %c0_30] : memref<1x1x128xf32, #tpu.memory_space<vmem>>, vector<1x1x128xf32>
    tpu.vector_store %arg5[%c0_28, %c0_29, %c0_30], %74 {strides = array<i32>} : memref<1x1x128xf32, #tpu.memory_space<vmem>>, vector<1x1x128xf32>,
    return
  }
  func.func @transform_0(%arg0: i32) -> (i32, i32, i32) {
    %c0_i32 = arith.constant 0 : i32
    %c0_i32_0 = arith.constant 0 : i32
    %c0_i32_1 = arith.constant 0 : i32
    return %c0_i32, %c0_i32_0, %arg0 : i32, i32, i32
  }
  func.func @transform_1(%arg0: i32) -> (i32, i32, i32) {
    %c0_i32 = arith.constant 0 : i32
    %c0_i32_0 = arith.constant 0 : i32
    %c0_i32_1 = arith.constant 0 : i32
    %c0_i32_2 = arith.constant 0 : i32
    return %c0_i32, %c0_i32_0, %c0_i32_1 : i32, i32, i32
  }
  func.func @transform_2(%arg0: i32) -> (i32, i32, i32) {
    %c0_i32 = arith.constant 0 : i32
    %c0_i32_0 = arith.constant 0 : i32
    %c0_i32_1 = arith.constant 0 : i32
    %c0_i32_2 = arith.constant 0 : i32
    return %c0_i32, %c0_i32_0, %c0_i32_1 : i32, i32, i32
  }
  func.func @transform_3(%arg0: i32) -> (i32, i32, i32) {
    %c0_i32 = arith.constant 0 : i32
    %c0_i32_0 = arith.constant 0 : i32
    %c0_i32_1 = arith.constant 0 : i32
    %c0_i32_2 = arith.constant 0 : i32
    return %c0_i32, %c0_i32_0, %c0_i32_1 : i32, i32, i32
  }
  func.func @transform_4(%arg0: i32) -> (i32, i32, i32) {
    %c0_i32 = arith.constant 0 : i32
    %c0_i32_0 = arith.constant 0 : i32
    %c0_i32_1 = arith.constant 0 : i32
    return %c0_i32, %c0_i32_0, %arg0 : i32, i32, i32
  }
}

</mosaic_0001>

<bundles_post_ra>
// kernel: tpu_custom_call.1
= control target key start
LH: loop header
LB: loop body
LE: loop exit
PB: predicated region body
PF: predicated region fallthrough
CT: control target
= control target key end

     0   :  { %v149_v1 = vmov 0   ;;  %s203_s0 = inlined_call_operand.vmem [shape: f32[1,4,128], index: 0, kind: input, shape index: {}]   ;;  %s204_s1 = inlined_call_operand.vmem [shape: f32[1,4,1], index: 1, kind: input, shape index: {}]   ;;  %s205_s2 = inlined_call_operand.vmem [shape: f32[1,4,1], index: 2, kind: input, shape index: {}]   ;;  %s206_s3 = inlined_call_operand.vmem [shape: f32[1,4,1], index: 3, kind: input, shape index: {}]   ;;  %s207_s4 = inlined_call_operand.hbm [shape: f32[1,1,128], index: 4, kind: output, shape index: {}]  }
   0x1   :  { %v20_v0 = vld [vmem:[%s205_s2] sm:$0xf]  ;;  %117 = vset.pattern.permute.xlu0 %v149_v1  ;;  %118 = vset.pattern.permute.xlu1 %v149_v1 }
   0x2   :  { %v21_v2 = vld [vmem:[%s206_s3] sm:$0xf] }
   0x3   :  { %9 = vsyncpa [#allocation3], 0  ;;  %25 = vperm.xlu0 %117, %v20_v0   ;;  %69 = vperm.xlu1 %118, %v21_v2   ;;  %v19_v3 = vld [vmem:[%s204_s1] sm:$0xf]  ;;  %vm73_vm1 = vcmask 1043456   ;;  %v150_v47 = vmov 0.0  }
   0x4   :  { %v18_v4 = vld [vmem:[%s203_s0] sm:$0xf]  ;;  %s151_s0 = smov [#allocation2]  }
   0x5   :  { %v22_v5 = vmul.f32 %v18_v4, %v18_v4  ;;  %vm66_vm0 = vcmp.ne.f32.partialorder %v18_v4, 0.0  ;;  %s104_s1 = sshll.u32 %s151_s0, 4  ;;  %s105_s1 = int_to_ptr.vmem [resolvable:$true] %s104_s1 }
   0x6   :  { %s125_s2 = scalar_lea.vmem %s105_s1, 16  ;;  %s129_s3 = scalar_lea.vmem %s105_s1, 32 }
   0x7   :  { %32 = vperm.xlu0 %117, %v19_v3   ;;  %p126_p0 = scmp.ne.s32.totalorder %s105_s1, %s125_s2  ;;  %p130_p1 = scmp.lt.s32.totalorder %s105_s1, %s105_s1 }
   0x8   :  { %p131_p2 = scmp.lt.s32.totalorder %s129_s3, %s125_s2 }
   0xa   :  { %p132_p3 = por %p131_p2, %p130_p1 }
   0xc   :  { %p133_p4 = pnand %p132_p3, %p126_p0 }
  0x82   :  { %v26_v6 = vpop.permute.xlu0 %25  ;;  %v70_v16 = vpop.permute.xlu1 %69 }
  0x83   :  { %v28_v7 = vmul.f32 %v26_v6, %v22_v5  ;;  %v72_v17 = vsel %vm66_vm0, %v70_v16, 4.0 }
  0x84   :  { %v74_v21 = vsel %vm73_vm1, %v72_v17, inf }
  0x85   :  { %v29_v8 = vadd.f32 2.0, %v28_v7  ;;  %v75_v24 = vrot.slane %v74_v21, 4 }
  0x86   :  { %v33_v9 = vpop.permute.xlu0 %32 }
  0x87   :  { %119 = vrsqrt.f32 %v29_v8  ;;  %v35_v10 = vmul.f32 %v33_v9, %v18_v4  ;;  %v76_v28 = vmin.f32 %v74_v21, %v75_v24 }
  0x89   :  { %v77_v32 = vrot.slane %v76_v28, 2 }
  0x8b   :  { %v78_v35 = vmin.f32 %v76_v28, %v77_v32 }
  0x8d   :  { %v79_v38 = vrot.slane %v78_v35, 1 }
  0x8f   :  { %v80_v42 = vmin.f32 %v78_v35, %v79_v38 }
  0x91   :  { %v120_v11 = vpop.eup %119  ;;  %vm81_vm2 = vcmp.eq.f32.partialorder %v70_v16, %v80_v42  ;;  %vm92_vm3 = vcmp.ge.f32.partialorder %v80_v42, 4.0 }
  0x92   :  { %v37_v12 = vmul.f32 %v120_v11, %v35_v10  ;;  %v112_v48 = vsel %vm81_vm2, 1.0, %v150_v47  ;;  %v113_v55 = vsel %vm92_vm3, 1.0, %v150_v47 }
  0x93   :  { %v95_v57 = vmul.f32 0.5, %v113_v55 }
  0x94   :  { %v38_v13 = vand.u32 2147483647, %v37_v12  ;;  %v54_v20 = vmul.f32 %v37_v12, %v37_v12  ;;  %v61_v44 = vand.u32 2147483648, %v37_v12 }
  0x96   :  { %v39_v14 = vmul.f32 0.3275911, %v38_v13  ;;  %v55_v25 = vsub.f32 0.0, %v54_v20 }
  0x98   :  { %v40_v15 = vadd.f32 1.0, %v39_v14  ;;  %v56_v29 = vmul.f32 1.442695, %v55_v25 }
  0x9a   :  { %121 = vrcp.f32 %v40_v15 }
  0x9b   :  { %123 = vpow2.f32 %v56_v29 }
  0xa4   :  { %v122_v18 = vpop.eup %121 }
  0xa5   :  { %v42_v19 = vmul.f32 %v122_v18, %v40_v15  ;;  %v124_v40 = vpop.eup %123 }
  0xa7   :  { %v43_v22 = vsub.f32 2.0, %v42_v19 }
  0xa9   :  { %v44_v23 = vmul.f32 %v122_v18, %v43_v22 }
  0xab   :  { %v45_v26 = vmul.f32 0.5307027, %v44_v23 }
  0xad   :  { %v46_v27 = vadd.f32 -0.72657603, %v45_v26 }
  0xaf   :  { %v47_v30 = vmul.f32 %v46_v27, %v44_v23 }
  0xb1   :  { %v48_v31 = vadd.f32 0.7107069, %v47_v30 }
  0xb3   :  { %v49_v33 = vmul.f32 %v48_v31, %v44_v23 }
  0xb5   :  { %v50_v34 = vadd.f32 -0.14224836, %v49_v33 }
  0xb7   :  { %v51_v36 = vmul.f32 %v50_v34, %v44_v23 }
  0xb9   :  { %v52_v37 = vadd.f32 0.1274148, %v51_v36 }
  0xbb   :  { %v53_v39 = vmul.f32 %v52_v37, %v44_v23 }
  0xbd   :  { %v58_v41 = vmul.f32 %v124_v40, %v53_v39 }
  0xbf   :  { %v59_v43 = vsub.f32 0.5, %v58_v41 }
  0xc1   :  { %v63_v45 = vor.u32 %v61_v44, %v59_v43 }
  0xc3   :  { %v65_v46 = vadd.f32 0.5, %v63_v45 }
  0xc5   :  { %v84_v49 = vmul.f32 %v112_v48, %v65_v46 }
  0xc7   :  { %v85_v50 = vsel %vm73_vm1, %v84_v49, 0.0 }
  0xc8   :  { %v86_v51 = vrot.slane %v85_v50, 4 }
  0xca   :  { %v87_v52 = vadd.f32 %v86_v51, %v85_v50 }
  0xcc   :  { %v88_v53 = vrot.slane %v87_v52, 2 }
  0xce   :  { %v89_v54 = vadd.f32 %v88_v53, %v87_v52 }
  0xd0   :  { %v90_v56 = vrot.slane %v89_v54, 1 }
  0xd2   :  { %v91_v58 = vadd.f32 %v90_v56, %v89_v54 }
  0xd4   :  { %v96_v59 = vadd.f32 %v95_v57, %v91_v58 }
  0xd6   :  { %97 = vst [vmem:[#allocation2] sm:$0x1] %v96_v59 }
  0xd7   :  { %136 = shalt.err (!%p133_p4)
}
  0xd8   :  { %s137_s25 = scalar_lea.hbm %s207_s4, 16 }
  0xd9   :  { %p138_p5 = scmp.ne.s32.totalorder %s207_s4, %s137_s25  ;;  %p141_p6 = scmp.lt.u32.totalorder %s137_s25, %s207_s4 }
  0xdb   :  { %p143_p7 = pnand %p141_p6, %p138_p5 }
  0xdd   :  { %146 = shalt.err (!%p143_p7)
}
  0xde   :  { %107 = dma.vmem_to_hbm [thread:$0]  %s105_s1, 16, %s207_s4, [#allocation3]  }
  0xdf   :  { %147 = dma.done.wait [#allocation3], 16  }
  0xe0   :  { %148 = vsyncadd [#allocation3], 4294967280 }
  0xe1   :  { %111 = vsyncpa [#allocation3], 1 }

</bundles_post_ra>
